<compile_context>
chip_gen: v7x
topology: tpu7x:2x2x1
jax: 0.10.0
libtpu: 0.0.40
codegen_flags: <defaults>
</compile_context>

<pallas_src>
import functools

import jax
import jax.numpy as jnp
from jax.experimental import pallas as pl
from jax.experimental.pallas import tpu as pltpu


def _layernorm_kernel(x_ref, gamma_ref, beta_ref, o_ref, *, eps, d_model):
    # x_ref: (tile, d); gamma_ref/beta_ref: (1, d) already float32.
    x = x_ref[...].astype(jnp.float32)

    # Fused single sweep: sum and sum-of-squares together (two XLU reductions, one VALU pass).
    s1 = jnp.sum(x, axis=-1, keepdims=True)        # (tile, 1)
    s2 = jnp.sum(x * x, axis=-1, keepdims=True)    # (tile, 1)

    n = jnp.float32(d_model)
    mean = s1 / n
    # torch.std() default is the unbiased estimator (divide by N-1).
    # NOTE: d_model == 1 gives NaN, same as torch.std of a single element.
    var = (s2 - s1 * mean) / jnp.float32(d_model - 1)
    var = jnp.maximum(var, 0.0)                    # guard fp cancellation
    std = jnp.sqrt(var)

    # Reciprocal on the tiny (tile, 1) column; the big (tile, d) op becomes a multiply.
    # approx=False keeps exact 1/(std+eps) so results match the reference bit-closely.
    inv = pl.reciprocal(std + eps, approx=False)

    out = (x - mean) * inv
    out = gamma_ref[...] * out + beta_ref[...]
    o_ref[...] = out.astype(o_ref.dtype)


def _round_up(x, m):
    return ((x + m - 1) // m) * m


def _choose_row_tile(rows, d, in_itemsize, out_itemsize):
    """Largest row tile whose double-buffered in+out tiles fit a VMEM budget that is
    safe on every TPU generation (v5e/v6e: 128 MiB, v7x: 64 MiB per TensorCore)."""
    # Sublane packing: f32 -> 8 rows/vreg, bf16/fp16 -> 16, int8/fp8 -> 32.
    sublane = 8 * max(1, 4 // max(in_itemsize, 1))
    pipeline_budget = 24 * 1024 * 1024                   # bytes for pipelined tiles
    per_row = 2 * d * (in_itemsize + out_itemsize)       # 2 = double buffering (in + out)
    tile = max(sublane, pipeline_budget // per_row)
    tile = min(tile, 1024, _round_up(rows, sublane))
    if rows >= 2 * sublane:
        # Keep the grid >= 2 (v7x megacore sharding) and limit zero-padding waste.
        half = _round_up(-(-rows // 2), sublane)
        tile = min(tile, half)
    tile = max(sublane, (tile // sublane) * sublane)
    return tile


def layer_norm(x, gamma, beta, eps=1e-12, *, row_tile=None):
    """x: [batch, seq_len, d_model]; gamma/beta: [d_model]."""
    b, s, d = x.shape
    rows = b * s
    x2 = x.reshape(rows, d)

    # Cast the affine params to f32 once here instead of every grid iteration.
    gamma2 = gamma.astype(jnp.float32).reshape(1, d)
    beta2 = beta.astype(jnp.float32).reshape(1, d)

    in_itemsize = jnp.dtype(x.dtype).itemsize
    out_itemsize = in_itemsize
    tile = _choose_row_tile(rows, d, in_itemsize, out_itemsize)
    if row_tile is not None:
        sublane = 8 * max(1, 4 // max(in_itemsize, 1))
        tile = max(sublane, _round_up(row_tile, sublane))

    grid_rows = pl.cdiv(rows, tile)
    padded_rows = grid_rows * tile
    if padded_rows != rows:
        # Zero padding is harmless: each row is normalized independently along the lane dim.
        x2 = jnp.pad(x2, ((0, padded_rows - rows), (0, 0)))

    # Scoped VMEM: pipelined tiles + params + headroom; clamp so it is valid on v7x (64 MiB
    # physical per TC) as well as v5e/v6e (128 MiB).
    tile_bytes = 2 * tile * d * (in_itemsize + out_itemsize)
    vmem_limit = int(min(max(tile_bytes + (4 << 20), 32 << 20), 48 << 20))

    # TODO(synk): if production d_model < 128, reshape so the lane dim is >=128 wide to avoid
    # masked partial stores (irrelevant when d_model is a multiple of 128).
    out2 = pl.pallas_call(
        functools.partial(_layernorm_kernel, eps=eps, d_model=d),
        out_shape=jax.ShapeDtypeStruct((padded_rows, d), x.dtype),
        grid_spec=pltpu.PrefetchScalarGridSpec(
            num_scalar_prefetch=0,
            grid=(grid_rows,),
            in_specs=[
                pl.BlockSpec((tile, d), lambda i: (i, 0)),
                pl.BlockSpec((1, d), lambda i: (0, 0)),
                pl.BlockSpec((1, d), lambda i: (0, 0)),
            ],
            out_specs=pl.BlockSpec((tile, d), lambda i: (i, 0)),
        ),
        compiler_params=pltpu.CompilerParams(
            dimension_semantics=("parallel",),
            vmem_limit_bytes=vmem_limit,
        ),
    )(x2, gamma2, beta2)

    if padded_rows != rows:
        out2 = out2[:rows]
    return out2.reshape(b, s, d)


if __name__ == "__main__":
    batch, seq_len, d_model = 2, 8, 32
    key = jax.random.PRNGKey(0)
    x = jax.random.normal(key, (batch, seq_len, d_model), dtype=jnp.float32)

    # Deterministic parameter init matching nn.Parameter(torch.ones/zeros(features)).
    gamma = jnp.ones((d_model,), dtype=jnp.float32)
    beta = jnp.zeros((d_model,), dtype=jnp.float32)

    out = layer_norm(x, gamma, beta, eps=1e-12)
    out = jax.block_until_ready(out)

    # Reference in plain JAX (same semantics as the PyTorch forward: unbiased std, eps outside sqrt).
    mean = jnp.mean(x, axis=-1, keepdims=True)
    std = jnp.sqrt(jnp.sum((x - mean) ** 2, axis=-1, keepdims=True) / (d_model - 1))
    ref = gamma * ((x - mean) / (std + 1e-12)) + beta
    assert jnp.allclose(out, ref, atol=2e-5, rtol=2e-5), "mismatch vs reference"

    print("KERNEL_OK")
</pallas_src>

<mosaic_0001>
module attributes {stable_mosaic.version = 11 : i64} {
  func.func @_layernorm_kernel(%arg0: i32, %arg1: memref<8x32xf32, #tpu.memory_space<vmem>>, %arg2: memref<1x32xf32, #tpu.memory_space<vmem>>, %arg3: memref<1x32xf32, #tpu.memory_space<vmem>>, %arg4: memref<8x32xf32, #tpu.memory_space<vmem>>) attributes {dimension_semantics = [#tpu.dimension_semantics<parallel>], iteration_bounds = array<i64: 2>, scalar_prefetch = 0 : i64, scratch_operands = 0 : i64, tpu.core_type = #tpu.core_type<tc>, window_params = [{transform_indices = @transform_0, window_bounds = array<i64: 8, 32>}, {pipeline_mode = #tpu.pipeline_mode<synchronous>, transform_indices = @transform_1, window_bounds = array<i64: 1, 32>}, {pipeline_mode = #tpu.pipeline_mode<synchronous>, transform_indices = @transform_2, window_bounds = array<i64: 1, 32>}, {transform_indices = @transform_3, window_bounds = array<i64: 8, 32>}]} {
    %c0 = arith.constant 0 : index
    %c0_0 = arith.constant 0 : index
    %0 = vector.load %arg1[%c0, %c0_0] : memref<8x32xf32, #tpu.memory_space<vmem>>, vector<8x32xf32>
    %cst = arith.constant dense<0.000000e+00> : vector<8xf32>
    %1 = vector.multi_reduction <add>, %0, %cst [1] : vector<8x32xf32> to vector<8xf32>
    %2 = vector.shape_cast %1 : vector<8xf32> to vector<8x1xf32>
    %3 = arith.mulf %0, %0 : vector<8x32xf32>
    %cst_1 = arith.constant dense<0.000000e+00> : vector<8xf32>
    %4 = vector.multi_reduction <add>, %3, %cst_1 [1] : vector<8x32xf32> to vector<8xf32>
    %5 = vector.shape_cast %4 : vector<8xf32> to vector<8x1xf32>
    %cst_2 = arith.constant 3.200000e+01 : f32
    %6 = vector.broadcast %cst_2 : f32 to vector<8x1xf32>
    %7 = arith.divf %2, %6 : vector<8x1xf32>
    %8 = arith.mulf %2, %7 : vector<8x1xf32>
    %9 = arith.subf %5, %8 : vector<8x1xf32>
    %cst_3 = arith.constant 3.100000e+01 : f32
    %10 = vector.broadcast %cst_3 : f32 to vector<8x1xf32>
    %11 = arith.divf %9, %10 : vector<8x1xf32>
    %cst_4 = arith.constant 0.000000e+00 : f32
    %12 = vector.broadcast %cst_4 : f32 to vector<8x1xf32>
    %13 = arith.maximumf %11, %12 : vector<8x1xf32>
    %14 = math.sqrt %13 : vector<8x1xf32>
    %cst_5 = arith.constant 9.99999996E-13 : f32
    %15 = vector.broadcast %cst_5 : f32 to vector<8x1xf32>
    %16 = arith.addf %14, %15 : vector<8x1xf32>
    %17 = tpu.reciprocal %16 : vector<8x1xf32> -> vector<8x1xf32>
    %18 = vector.broadcast %7 : vector<8x1xf32> to vector<8x32xf32>
    %19 = arith.subf %0, %18 : vector<8x32xf32>
    %20 = vector.broadcast %17 : vector<8x1xf32> to vector<8x32xf32>
    %21 = arith.mulf %19, %20 : vector<8x32xf32>
    %c0_6 = arith.constant 0 : index
    %c0_7 = arith.constant 0 : index
    %22 = vector.load %arg2[%c0_6, %c0_7] : memref<1x32xf32, #tpu.memory_space<vmem>>, vector<1x32xf32>
    %23 = vector.broadcast %22 : vector<1x32xf32> to vector<8x32xf32>
    %24 = arith.mulf %23, %21 : vector<8x32xf32>
    %c0_8 = arith.constant 0 : index
    %c0_9 = arith.constant 0 : index
    %25 = vector.load %arg3[%c0_8, %c0_9] : memref<1x32xf32, #tpu.memory_space<vmem>>, vector<1x32xf32>
    %26 = vector.broadcast %25 : vector<1x32xf32> to vector<8x32xf32>
    %27 = arith.addf %24, %26 : vector<8x32xf32>
    %c0_10 = arith.constant 0 : index
    %c0_11 = arith.constant 0 : index
    %28 = vector.load %arg4[%c0_10, %c0_11] : memref<8x32xf32, #tpu.memory_space<vmem>>, vector<8x32xf32>
    tpu.vector_store %arg4[%c0_10, %c0_11], %27 {strides = array<i32>} : memref<8x32xf32, #tpu.memory_space<vmem>>, vector<8x32xf32>,
    return
  }
  func.func @transform_0(%arg0: i32) -> (i32, i32) {
    %c0_i32 = arith.constant 0 : i32
    %c0_i32_0 = arith.constant 0 : i32
    return %arg0, %c0_i32 : i32, i32
  }
  func.func @transform_1(%arg0: i32) -> (i32, i32) {
    %c0_i32 = arith.constant 0 : i32
    %c0_i32_0 = arith.constant 0 : i32
    %c0_i32_1 = arith.constant 0 : i32
    return %c0_i32, %c0_i32_0 : i32, i32
  }
  func.func @transform_2(%arg0: i32) -> (i32, i32) {
    %c0_i32 = arith.constant 0 : i32
    %c0_i32_0 = arith.constant 0 : i32
    %c0_i32_1 = arith.constant 0 : i32
    return %c0_i32, %c0_i32_0 : i32, i32
  }
  func.func @transform_3(%arg0: i32) -> (i32, i32) {
    %c0_i32 = arith.constant 0 : i32
    %c0_i32_0 = arith.constant 0 : i32
    return %arg0, %c0_i32 : i32, i32
  }
}

</mosaic_0001>

<bundles_post_ra>
// kernel: tpu_custom_call.1
= control target key start
LH: loop header
LB: loop body
LE: loop exit
PB: predicated region body
PF: predicated region fallthrough
CT: control target
= control target key end

     0   :  { %8 = vsyncpa [#allocation3], 0  ;;  %s672_s0 = inlined_call_operand.hbm [shape: f32[16,32], index: 0, kind: input, shape index: {}]   ;;  %s673_s1 = inlined_call_operand.vmem [shape: f32[1,32], index: 1, kind: input, shape index: {}]   ;;  %s674_s2 = inlined_call_operand.vmem [shape: f32[1,32], index: 2, kind: input, shape index: {}]   ;;  %s675_s3 = inlined_call_operand.hbm [shape: f32[16,32], index: 3, kind: output, shape index: {}]  }
   0x1   :  { %10 = vsyncpa [#allocation3 + $0x1], 0 }
   0x2   :  { %11 = vsyncpa [#allocation4], 0 }
   0x3   :  { %13 = vsyncpa [#allocation4 + $0x1], 0  ;;  %s498_s12 = smov 0   ;;  %s500_s13 = smov 0  }
   0x4   :  { %s502_s14 = smov 0   ;;  %s504_s15 = smov 0  }
   0x5 LB: > { %s519_s16 = sadd.s32 4294967295, %s474_s15   ;;  %s314_s17 = sadd.s32 4294967294, %s474_s15   ;;  %s474_s15 = sphi %s504_s15, %s690_s15   ;;  %s470_s14 = sphi %s502_s14, %s689_s14   ;;  %s466_s13 = sphi %s500_s13, %s688_s13   ;;  %s462_s12 = sphi %s498_s12, %s687_s12  }
   0x6   : > { %s523_s18 = sadd.s32 1, %s474_s15   ;;  %s26_s19 = sadd.s32 1, %s470_s14 }
   0x7   : > { %s23_s20 = ssub.s32 %s474_s15, %s523_s18  ;;  %p33_p0 = scmp.ne.s32.totalorder %s470_s14, %s466_s13 }
   0x8   : > { %p24_p1 = scmp.eq.s32.totalorder %s23_s20, 0  ;;  %p34_p2 = scmp.eq.s32.totalorder %s474_s15, 0 }
   0x9   : > { %p39_p3 = scmp.ne.s32.totalorder %s466_s13, %s462_s12  ;;  %p40_p4 = scmp.eq.s32.totalorder %s519_s16, 0 }
   0xa   : > { %s535_s21 = scalar_select %p24_p1, %s470_s14, %s26_s19  }
   0xb   : > { %p537_p5 = por %p34_p2, %p33_p0  ;;  %p541_p6 = por %p40_p4, %p39_p3 }
   0xc   : > { %p105_p7 = scmp.eq.s32.totalorder %s519_s16, 1  ;;  %p111_p8 = scmp.eq.s32.totalorder %s314_s17, 1 }
   0xd   : > { %p340_p10 = scmp.lt.s32.totalorder %s474_s15, 2  ;;  %s137_s26 = sand.u32 1, %s470_s14  }
   0xe   : > { %p548_p11 = por %p105_p7, %p33_p0  ;;  %p552_p12 = por %p111_p8, %p39_p3 }
   0xf   : > { %s318_s27 = sshll.u32 %s474_s15, 7  ;;  %s317_s28 = sshll.u32 %s137_s26, 3 }
  0x10   : > { %s679_s24 = scalar_select %p548_p11, 1, 0 }
  0x11   : > { %s680_s25 = scalar_select %p552_p12, 1, 0 }
  0x12   : > { %s561_s4 = scalar_lea.hbm %s672_s0, %s318_s27  ;;  %s141_s5 = scalar_lea.vmem [#allocation2], %s317_s28 }
  0x13   : > { %s148_s6 = sshll.u32 %s141_s5, 4  ;;  %p565_p13 = pnand %p340_p10, %p537_p5  ;;  %s569_s6 = int_to_ptr.vmem [resolvable:$true] %s148_s6 }
  0x14   : > { %s138_s8 = scalar_lea.sflag [#allocation3], %s137_s26  ;;  %s378_s9 = scalar_lea.hbm %s561_s4, 128 }
  0x15   : > { %p379_p2 = scmp.ne.s32.totalorder %s561_s4, %s378_s9  ;;  %p380_p3 = pneg %p565_p13 }
  0x16   : > { %s383_s17 = scalar_lea.hbm %s672_s0, 256  ;;  %p384_p5 = scmp.lt.u32.totalorder %s561_s4, %s672_s0 }
  0x17   : > { %p381_p4 = pnand %p380_p3, %p379_p2  ;;  %p385_p8 = scmp.lt.u32.totalorder %s383_s17, %s378_s9 }
  0x18   : > { %p387_p9 = scmp.lt.u32.totalorder %s378_s9, %s561_s4 }
  0x19   : > { %p382_p7 = pneg %p381_p4  ;;  %p386_p10 = por %p385_p8, %p384_p5 }
  0x1b   : > { %p388_p0 = por %p387_p9, %p386_p10 }
  0x1d   : > { %p389_p1 = pnand %p388_p0, %p382_p7 }
  0x1f   : > { %392 = shalt.err (!%p389_p1)
}
  0x20   : > { %s393_s22 = scalar_lea.vmem %s569_s6, 128  ;;  %s476_s26 = smov [#allocation2]  }
  0x21   : > { %p394_p2 = scmp.ne.s32.totalorder %s569_s6, %s393_s22  ;;  %s398_s27 = sshll.u32 %s476_s26, 4  ;;  %s399_s27 = int_to_ptr.vmem [resolvable:$false] %s398_s27 }
  0x22   : > { %s400_s28 = scalar_lea.vmem %s399_s27, 256  ;;  %p401_p11 = scmp.lt.s32.totalorder %s569_s6, %s399_s27 }
  0x23   : > { %p396_p4 = pnand %p394_p2, %p380_p3  ;;  %p402_p5 = scmp.lt.s32.totalorder %s400_s28, %s393_s22 }
  0x25   : > { %p397_p12 = pneg %p396_p4  ;;  %p403_p8 = por %p402_p5, %p401_p11 }
  0x27   : > { %p404_p9 = pnand %p403_p8, %p397_p12 }
  0x29   : > { %407 = shalt.err (!%p404_p9)
}
  0x2a   : > { %335 = dma.hbm_to_vmem [thread:$0]  (!%p565_p13), %s561_s4, 128, %s569_s6, %s138_s8  }
  0x2b   : > { %p682_p0 = scmp.lt.s32.totalorder %s474_s15, 3  ;;  %p683_p1 = scmp.ge.s32.totalorder %s474_s15, 1 }
  0x2d   : > { %p154_p3 = pnand %p683_p1, %p682_p0 }
  0x2e   : > { %s603_s29 = sand.u32 (!%p154_p3), 1, %s466_s13  }
  0x2f   : > { %157 = sbr.rel (%p154_p3) target bundleno = 257 (0x101), region = 32  ;;  %s320_s30 = sshll.u32 (!%p154_p3), %s603_s29, 3 }
  0x30   : > { %s160_s5 = scalar_lea.sflag (!%p154_p3), [#allocation3], %s603_s29  ;;  %s163_s7 = scalar_lea.vmem (!%p154_p3), [#allocation2], %s320_s30 }
  0x36   : > { %453 = dma.done.wait (%p541_p6), %s160_s5, 128  }
  0x37   : > { %455 = vsyncadd (%p541_p6), %s160_s5, 4294967168  ;;  %vm187_vm0 = vcmask 261120   ;;  %v186_v0 = vld [vmem:[%s163_s7] sm:$0xff]  ;;  %s325_s9 = sshll.u32 %s519_s16, 7  ;;  %s185_s10 = scalar_lea.vmem [#allocation5], %s320_s30 }
  0x38   : > { %v188_v1 = vsel %vm187_vm0, %v186_v0, 0.0  ;;  %v191_v2 = vmul.f32 %v186_v0, %v186_v0  ;;  %v322_v19 = vld [vmem:[%s673_s1] ss:$0 sm:$0xff]  ;;  %s244_s11 = sshll.u32 %s185_s10, 4  ;;  %s627_s20 = scalar_lea.hbm %s675_s3, %s325_s9  ;;  %s629_s11 = int_to_ptr.vmem [resolvable:$true] %s244_s11 }
  0x39   : > { %189 = vadd.xlane.f32.xlu0 %v188_v1  ;;  %v323_v21 = vld [vmem:[%s674_s2] ss:$0 sm:$0xff]  ;;  %s231_s22 = scalar_lea.sflag [#allocation4], %s603_s29  ;;  %s408_s26 = scalar_lea.vmem %s629_s11, 128 }
  0x3a   : > { %v192_v3 = vsel %vm187_vm0, %v191_v2, 0.0  ;;  %p409_p6 = scmp.ne.s32.totalorder %s629_s11, %s408_s26  ;;  %p684_p11 = scmp.ne.s32.totalorder %s679_s24, 0 }
  0x3b   : > { %s477_s16 = smov [#allocation5]  }
  0x3c   : > { %p410_p12 = pnand %p409_p6, %p684_p11  ;;  %s412_s27 = sshll.u32 %s477_s16, 4  ;;  %s413_s27 = int_to_ptr.vmem [resolvable:$false] %s412_s27 }
  0x3d   : > { %193 = vadd.xlane.f32.xlu0 %v192_v3  ;;  %s414_s28 = scalar_lea.vmem %s413_s27, 256  ;;  %p415_p7 = scmp.lt.s32.totalorder %s629_s11, %s413_s27 }
  0x3e   : > { %p411_p13 = pneg %p410_p12  ;;  %p416_p10 = scmp.lt.s32.totalorder %s414_s28, %s408_s26 }
  0x40   : > { %p417_p2 = por %p416_p10, %p415_p7 }
  0x42   : > { %p418_p4 = pnand %p417_p2, %p411_p13 }
  0xc6   : > { %v190_v4 = vpop.xlane.xlu0 %189 }
  0xc7   : > { %v196_v5 = vmul.f32 0.03125, %v190_v4 }
  0xc9   : > { %v197_v6 = vmul.f32 %v196_v5, %v190_v4  ;;  %v211_v17 = vsub.f32 %v186_v0, %v196_v5 }
  0xca   : > { %v194_v7 = vpop.xlane.xlu0 %193 }
  0xcb   : > { %v198_v8 = vsub.f32 %v194_v7, %v197_v6 }
  0xcd   : > { %v200_v9 = vmul.f32 0.032258064, %v198_v8 }
  0xcf   : > { %v201_v10 = vmax.f32 %v200_v9, 0.0 }
  0xd1   : > { %374 = vrsqrt.f32 %v201_v10  ;;  %vm204_vm1 = vcmp.eq.f32.partialorder %v201_v10, inf  ;;  %v207_v13 = vand.u32 2147483648, %v201_v10  ;;  %vm206_vm2 = vcmp.eq.f32.partialorder %v201_v10, 0.0 }
  0xdb   : > { %v375_v11 = vpop.eup %374 }
  0xdc   : > { %v203_v12 = vmul.f32 %v375_v11, %v201_v10 }
  0xde   : > { %v205_v14 = vsel %vm204_vm1, %v201_v10, %v203_v12 }
  0xdf   : > { %v208_v15 = vsel %vm206_vm2, %v207_v13, %v205_v14 }
  0xe0   : > { %v209_v16 = vadd.f32 1e-12, %v208_v15 }
  0xe2   : > { %376 = vrcp.f32 %v209_v16 }
  0xec   : > { %v377_v18 = vpop.eup %376 }
  0xed   : > { %v212_v20 = vmul.f32 %v377_v18, %v211_v17 }
  0xef   : > { %v220_v22 = vmul.f32 %v322_v19, %v212_v20 }
  0xf1   : > { %v228_v23 = vadd.f32 %v323_v21, %v220_v22 }
  0xf3   : > { %229 = vst.msk [vmem:[%s185_s10] sm:$0xff] %vm187_vm0, %v228_v23 }
  0xf4   : > { %421 = shalt.err (!%p418_p4)
}
  0xf5   : > { %s422_s29 = scalar_lea.hbm %s627_s20, 128  ;;  %s426_s7 = scalar_lea.hbm %s675_s3, 256 }
  0xf6   : > { %p423_p5 = scmp.ne.s32.totalorder %s627_s20, %s422_s29  ;;  %p427_p0 = scmp.lt.u32.totalorder %s627_s20, %s675_s3 }
  0xf7   : > { %p428_p1 = scmp.lt.u32.totalorder %s426_s7, %s422_s29  ;;  %p430_p6 = scmp.lt.u32.totalorder %s422_s29, %s627_s20 }
  0xf8   : > { %p424_p8 = pnand %p423_p5, %p684_p11 }
  0xf9   : > { %p429_p3 = por %p428_p1, %p427_p0 }
  0xfa   : > { %p425_p9 = pneg %p424_p8 }
  0xfb   : > { %p431_p12 = por %p430_p6, %p429_p3 }
  0xfd   : > { %p432_p13 = pnand %p431_p12, %p425_p9 }
  0xff   : > { %435 = shalt.err (!%p432_p13)
}
 0x100   : > { %330 = dma.vmem_to_hbm [thread:$0]  (%p684_p11), %s629_s11, 128, %s627_s20, %s231_s22  }
 0x101 PF: > { %s256_s6 = sand.u32 1, %s462_s12   ;;  %p685_p7 = scmp.ne.s32.totalorder %s680_s25, 0 }
 0x102   : > { %p686_p10 = scmp.ge.s32.totalorder %s474_s15, 2  ;;  %s257_s8 = scalar_lea.sflag [#allocation4], %s256_s6 }
 0x104   : > { %p337_p2 = pnand %p686_p10, %p685_p7 }
 0x106   : > { %457 = dma.done.wait (!%p337_p2), %s257_s8, 128  }
 0x107   : > { %459 = vsyncadd (!%p337_p2), %s257_s8, 4294967168  ;;  %p16_p4 = scmp.ge.s32.totalorder %s523_s18, 4   ;;  %s687_s12 = smov %s466_s13 }
 0x108   : > { %s688_s13 = smov %s470_s14  ;;  %s689_s14 = smov %s535_s21 }
 0x109   : > { %s690_s15 = smov %s523_s18  ;;  %18 = sbr.rel (!%p16_p4) target bundleno = 5 (0x5), region = 77 }
 0x110   :  { %262 = vsyncpa [#allocation3], 1 }
 0x111   :  { %264 = vsyncpa [#allocation3 + $0x1], 1 }
 0x112   :  { %265 = vsyncpa [#allocation4], 1 }
 0x113   :  { %267 = vsyncpa [#allocation4 + $0x1], 1 }

</bundles_post_ra>
